<compile_context>
chip_gen: v6e
topology: v6e:2x2x1
jax: 0.10.0
libtpu: 0.0.40
codegen_flags: <defaults>
</compile_context>

<pallas_src>
import jax
import jax.numpy as jnp
from jax.experimental import pallas as pl
from jax.experimental.pallas import tpu as pltpu


_NEG_BIG = -1e30  # finite "minus infinity" bias for padded vocab columns


def _round_up(x, m):
    return (x + m - 1) // m * m


def _spec(shape, index_map, pipeline_mode=None):
    if pipeline_mode is None:
        return pl.BlockSpec(shape, index_map)
    return pl.BlockSpec(shape, index_map, pipeline_mode=pipeline_mode)


def _fwd_kernel(x_ref, w1_ref, b1_ref, w2_ref, b2_ref, w3_ref, b3_ref,
                logits_ref, lse_ref, h2_sc, m_sc, l_sc):
    """Grid = (batch_tiles, vocab_tiles); vocab is the (inner) reduction axis.

    x_ref:  [Bt, 5E_pad] bf16 (resident across vocab tiles)
    w1/w2:  bf16, resident; b1/b2/b3: f32
    w3_ref: [H, Vt] bf16 (streamed per vocab tile)
    logits_ref: [Bt, Vt] f32   lse_ref: [Bt, 1] f32 (written at last vocab step)
    """
    j = pl.program_id(1)

    # fc1 + relu + fc2 + relu computed once per batch tile (vocab step 0),
    # cached as bf16 in VMEM scratch and reused by every vocab tile.
    # (bf16 h2 cache is a deliberate, documented precision trade vs the f32 ref.)
    @pl.when(j == 0)
    def _():
        h1 = jnp.dot(x_ref[...], w1_ref[...],
                     preferred_element_type=jnp.float32) + b1_ref[...]
        h1 = jnp.maximum(h1, 0.0).astype(jnp.bfloat16)
        h2 = jnp.dot(h1, w2_ref[...],
                     preferred_element_type=jnp.float32) + b2_ref[...]
        # dropout(p=0.5) in eval/inference mode == identity
        h2_sc[...] = jnp.maximum(h2, 0.0).astype(jnp.bfloat16)
        m_sc[...] = jnp.full_like(m_sc, -jnp.inf)
        l_sc[...] = jnp.zeros_like(l_sc)

    # fc3 logits for this vocab tile (bf16 MXU, f32 accumulation)
    logits = jnp.dot(h2_sc[...], w3_ref[...],
                     preferred_element_type=jnp.float32) + b3_ref[...]
    logits_ref[...] = logits

    # online (flash-style) running max / running sum for the log-softmax denom
    m_prev = m_sc[...]
    m_new = jnp.maximum(m_prev, jnp.max(logits, axis=1, keepdims=True))
    l_sc[...] = (l_sc[...] * jnp.exp(m_prev - m_new)
                 + jnp.sum(jnp.exp(logits - m_new), axis=1, keepdims=True))
    m_sc[...] = m_new

    @pl.when(j == pl.num_programs(1) - 1)
    def _():
        lse_ref[...] = m_sc[...] + jnp.log(l_sc[...])


def neural_language_model_forward(token_ids, params, *, batch_tile=None, vocab_tile=None):
    """token_ids: int32 [B, 5].  Returns log-probs [B, V] (float32)."""
    emb = params["embedding"]                 # [V, E] f32, frozen
    w1, b1 = params["w1"], params["b1"]       # [5E, H], [1, H]
    w2, b2 = params["w2"], params["b2"]       # [H, H],  [1, H]
    w3, b3 = params["w3"], params["b3"]       # [H, V],  [1, V]

    B, ctx = token_ids.shape
    V, E = emb.shape
    H = w1.shape[1]
    in_dim = ctx * E
    in_dim_pad = _round_up(in_dim, 128)       # lane-aligned fc1 contraction dim

    # --- generation-aware VMEM budget -----------------------------------------
    try:
        vmem_cap = int(pltpu.get_tpu_info().vmem_capacity_bytes)
    except Exception:
        vmem_cap = 0
    if vmem_cap:
        vmem_limit = int(vmem_cap * 0.85)             # ~108 MiB v5e/v6e, ~54 MiB v7x
        tight_vmem = vmem_cap <= 96 * 1024 * 1024     # v7x-like: 64 MiB per TC, 2 TCs
    else:
        vmem_limit = 48 * 1024 * 1024                 # safe on every generation
        tight_vmem = False

    # --- batch tiling: big tiles fill the MXU ----------------------------------
    if batch_tile is None:
        batch_tile = 256                      # fills v6e/v7x MXU rows; >=2x v5e rows
    assert batch_tile % 16 == 0, "bf16 sublane tiling needs batch_tile % 16 == 0"
    bt = min(batch_tile, _round_up(B, 16))
    B_pad = _round_up(B, bt)
    # v7x megacore: keep >=2 batch tiles so the "parallel" axis shards over both TCs.
    if tight_vmem and B_pad // bt < 2 and B_pad >= 64:
        bt = _round_up(B_pad // 2, 16)
        B_pad = _round_up(B, bt)

    # --- vocab tiling: largest lane-dense w3 tile that fits the VMEM budget ----
    V128 = _round_up(V, 128)
    res_bufs = 1 if tight_vmem else 2
    resident_bytes = res_bufs * (bt * in_dim_pad * 2 + in_dim_pad * H * 2
                                 + H * 4 + H * H * 2 + H * 4)
    resident_bytes += bt * H * 2 + 2 * bt * 4                  # h2 / m / l scratch
    if vocab_tile is None:
        budget = int(vmem_limit * 0.75) - resident_bytes
        vt = 128
        for cand in sorted({128, 256, 512, 1024, 2048, 4096, V128}, reverse=True):
            if cand > V128 or cand % 128:
                continue
            if _round_up(V, cand) - V128 > cand // 2:          # too much padding waste
                continue
            n_vtiles = _round_up(V, cand) // cand
            w3_bufs = 3 if n_vtiles >= 3 else 2
            need = (w3_bufs * (H * cand * 2 + cand * 4)        # w3 + b3 tiles
                    + 2 * (bt * cand * 4 + bt * 4))            # logits + lse tiles
            if need <= budget:
                vt = cand
                break
    else:
        assert vocab_tile % 128 == 0
        vt = min(vocab_tile, V128)
    V_pad = _round_up(V, vt)

    # --- padding ---------------------------------------------------------------
    if B_pad != B:
        token_ids = jnp.pad(token_ids, ((0, B_pad - B), (0, 0)))
    if V_pad != V:
        w3 = jnp.pad(w3, ((0, 0), (0, V_pad - V)))
        b3 = jnp.pad(b3, ((0, 0), (0, V_pad - V)), constant_values=_NEG_BIG)

    # Embedding lookup + flatten + K-pad (plain JAX gather glue).
    # TODO(synk): fuse the gather via PrefetchScalarGridSpec(token_ids) + pl.Element rows.
    x_flat = jnp.take(emb, token_ids, axis=0).reshape(B_pad, in_dim)
    if in_dim_pad != in_dim:
        x_flat = jnp.pad(x_flat, ((0, 0), (0, in_dim_pad - in_dim)))
        w1 = jnp.pad(w1, ((0, in_dim_pad - in_dim), (0, 0)))
    x_flat = x_flat.astype(jnp.bfloat16)

    # bf16 weights for the MXU; biases stay f32 (added to the f32 accumulator).
    w1b, w2b, w3b = (w.astype(jnp.bfloat16) for w in (w1, w2, w3))
    b1f, b2f, b3f = (b.astype(jnp.float32) for b in (b1, b2, b3))

    grid = (B_pad // bt, V_pad // vt)

    # Single-buffer the VMEM-resident specs on tight-VMEM chips (v7x);
    # triple-buffer the streamed w3/b3 when there are enough vocab tiles.
    resident_mode = pl.Buffered(1) if tight_vmem else None
    stream_mode = pl.Buffered(3) if grid[1] >= 3 else None

    # Advisory cost estimate so XLA overlaps the gather/casts around the call.
    flops = 2.0 * B_pad * (in_dim_pad * H + H * H + H * V_pad)
    bytes_accessed = (x_flat.size * 2
                      + (in_dim_pad * H + H * H) * 2
                      + grid[0] * (H * V_pad * 2 + V_pad * 4)   # w3/b3 re-streamed per batch tile
                      + B_pad * V_pad * 4 + B_pad * 4)
    cost = pl.CostEstimate(flops=int(flops),
                           transcendentals=int(B_pad * V_pad),
                           bytes_accessed=int(bytes_accessed))

    logits, lse = pl.pallas_call(
        _fwd_kernel,
        out_shape=(jax.ShapeDtypeStruct((B_pad, V_pad), jnp.float32),
                   jax.ShapeDtypeStruct((B_pad, 1), jnp.float32)),
        grid_spec=pltpu.PrefetchScalarGridSpec(
            num_scalar_prefetch=0,
            grid=grid,
            in_specs=[
                _spec((bt, in_dim_pad), lambda i, j: (i, 0), resident_mode),  # x
                _spec((in_dim_pad, H), lambda i, j: (0, 0), resident_mode),   # w1
                _spec((1, H), lambda i, j: (0, 0), resident_mode),            # b1
                _spec((H, H), lambda i, j: (0, 0), resident_mode),            # w2
                _spec((1, H), lambda i, j: (0, 0), resident_mode),            # b2
                _spec((H, vt), lambda i, j: (0, j), stream_mode),             # w3 (streamed)
                _spec((1, vt), lambda i, j: (0, j), stream_mode),             # b3 (streamed)
            ],
            out_specs=(
                pl.BlockSpec((bt, vt), lambda i, j: (i, j)),                  # raw logits
                pl.BlockSpec((bt, 1), lambda i, j: (i, 0)),                   # lse side-output
            ),
            scratch_shapes=[
                pltpu.VMEM((bt, H), jnp.bfloat16),                            # cached h2
                pltpu.VMEM((bt, 1), jnp.float32),                             # running max
                pltpu.VMEM((bt, 1), jnp.float32),                             # running sum
            ],
        ),
        compiler_params=pltpu.CompilerParams(
            dimension_semantics=("parallel", "arbitrary"),
            vmem_limit_bytes=int(vmem_limit)),
        cost_estimate=cost,
    )(x_flat, w1b, b1f, w2b, b2f, w3b, b3f)

    # log-softmax normalization: fused by XLA with the final slice (no extra kernel,
    # no badly-tiled pass). Padded columns carry ~-1e30 and are sliced away here.
    return logits[:B, :V] - lse[:B]


def init_params(key, vocab_size, embedding_dim, hidden_dim):
    """Deterministic synthetic parameter init matching the module's shapes."""
    k_emb, k1, k2, k3, kb1, kb2, kb3 = jax.random.split(key, 7)
    ctx = 5
    in_dim = embedding_dim * ctx
    scale = 0.1
    return {
        "embedding": jax.random.normal(k_emb, (vocab_size, embedding_dim), jnp.float32) * scale,
        "w1": jax.random.normal(k1, (in_dim, hidden_dim), jnp.float32) * scale,
        "b1": jax.random.normal(kb1, (1, hidden_dim), jnp.float32) * scale,
        "w2": jax.random.normal(k2, (hidden_dim, hidden_dim), jnp.float32) * scale,
        "b2": jax.random.normal(kb2, (1, hidden_dim), jnp.float32) * scale,
        "w3": jax.random.normal(k3, (hidden_dim, vocab_size), jnp.float32) * scale,
        "b3": jax.random.normal(kb3, (1, vocab_size), jnp.float32) * scale,
    }


def reference_forward(token_ids, params):
    """Pure-JAX f32 reference (eval-mode dropout = identity)."""
    x = jnp.take(params["embedding"], token_ids, axis=0).reshape(token_ids.shape[0], -1)
    h1 = jnp.maximum(x @ params["w1"] + params["b1"], 0.0)
    h2 = jnp.maximum(h1 @ params["w2"] + params["b2"], 0.0)
    logits = h2 @ params["w3"] + params["b3"]
    return jax.nn.log_softmax(logits, axis=1)


if __name__ == "__main__":
    # Small but vreg/MXU-aligned demo shapes: H mult of 128, V mult of 128.
    vocab_size = 512
    embedding_dim = 16
    hidden_dim = 128
    batch = 32
    ctx = 5

    key = jax.random.PRNGKey(0)
    k_params, k_tokens = jax.random.split(key)

    params = init_params(k_params, vocab_size, embedding_dim, hidden_dim)
    token_ids = jax.random.randint(k_tokens, (batch, ctx), 0, vocab_size, dtype=jnp.int32)

    fwd = jax.jit(neural_language_model_forward)   # auto batch/vocab tiling
    log_probs = fwd(token_ids, params)
    log_probs = jax.block_until_ready(log_probs)

    assert log_probs.shape == (batch, vocab_size)

    # Sanity 1: log-probs exponentiate-sum to 1 per row.
    row_sums = jnp.exp(log_probs).sum(axis=1)
    assert bool(jnp.all(jnp.abs(row_sums - 1.0) < 1e-3)), row_sums

    # Sanity 2: close to the f32 pure-JAX reference (bf16 matmul tolerance).
    ref = reference_forward(token_ids, params)
    max_err = float(jnp.max(jnp.abs(log_probs - ref)))
    assert max_err < 5e-2, max_err

    print("KERNEL_OK")
</pallas_src>

<mosaic_0001>
module attributes {stable_mosaic.version = 11 : i64} {
  func.func @_fwd_kernel(%arg0: i32, %arg1: i32, %arg2: memref<32x128xbf16, #tpu.memory_space<vmem>>, %arg3: memref<128x128xbf16, #tpu.memory_space<vmem>>, %arg4: memref<1x128xf32, #tpu.memory_space<vmem>>, %arg5: memref<128x128xbf16, #tpu.memory_space<vmem>>, %arg6: memref<1x128xf32, #tpu.memory_space<vmem>>, %arg7: memref<128x512xbf16, #tpu.memory_space<vmem>>, %arg8: memref<1x512xf32, #tpu.memory_space<vmem>>, %arg9: memref<32x512xf32, #tpu.memory_space<vmem>>, %arg10: memref<32x1xf32, #tpu.memory_space<vmem>>, %arg11: memref<32x128xbf16, #tpu.memory_space<vmem>>, %arg12: memref<32x1xf32, #tpu.memory_space<vmem>>, %arg13: memref<32x1xf32, #tpu.memory_space<vmem>>) attributes {dimension_semantics = [#tpu.dimension_semantics<parallel>, #tpu.dimension_semantics<arbitrary>], iteration_bounds = array<i64: 1, 1>, scalar_prefetch = 0 : i64, scratch_operands = 3 : i64, tpu.core_type = #tpu.core_type<tc>, window_params = [{transform_indices = @transform_0, window_bounds = array<i64: 32, 128>}, {pipeline_mode = #tpu.pipeline_mode<synchronous>, transform_indices = @transform_1, window_bounds = array<i64: 128, 128>}, {pipeline_mode = #tpu.pipeline_mode<synchronous>, transform_indices = @transform_2, window_bounds = array<i64: 1, 128>}, {pipeline_mode = #tpu.pipeline_mode<synchronous>, transform_indices = @transform_3, window_bounds = array<i64: 128, 128>}, {pipeline_mode = #tpu.pipeline_mode<synchronous>, transform_indices = @transform_4, window_bounds = array<i64: 1, 128>}, {transform_indices = @transform_5, window_bounds = array<i64: 128, 512>}, {transform_indices = @transform_6, window_bounds = array<i64: 1, 512>}, {transform_indices = @transform_7, window_bounds = array<i64: 32, 512>}, {transform_indices = @transform_8, window_bounds = array<i64: 32, 1>}]} {
    %c0_i32 = arith.constant 0 : i32
    %0 = arith.cmpi eq, %arg1, %c0_i32 : i32
    %1 = arith.extui %0 : i1 to i32
    %c0_i32_0 = arith.constant 0 : i32
    %2 = arith.cmpi ne, %1, %c0_i32_0 : i32
    scf.if %2 {
      %c0_20 = arith.constant 0 : index
      %c0_21 = arith.constant 0 : index
      %29 = vector.load %arg2[%c0_20, %c0_21] : memref<32x128xbf16, #tpu.memory_space<vmem>>, vector<32x128xbf16>
      %c0_22 = arith.constant 0 : index
      %c0_23 = arith.constant 0 : index
      %30 = vector.load %arg3[%c0_22, %c0_23] : memref<128x128xbf16, #tpu.memory_space<vmem>>, vector<128x128xbf16>
      %cst_24 = arith.constant dense<0.000000e+00> : vector<32x128xf32>
      %31 = tpu.matmul %29, %30, %cst_24 {dimension_numbers = #tpu.dot_dimension_numbers<[1], [0], [0], [1], [0, 0, 1, 1], [], []>} : vector<32x128xbf16>, vector<128x128xbf16>, vector<32x128xf32> -> vector<32x128xf32>
      %c0_25 = arith.constant 0 : index
      %c0_26 = arith.constant 0 : index
      %32 = vector.load %arg4[%c0_25, %c0_26] : memref<1x128xf32, #tpu.memory_space<vmem>>, vector<1x128xf32>
      %33 = vector.broadcast %32 : vector<1x128xf32> to vector<32x128xf32>
      %34 = arith.addf %31, %33 : vector<32x128xf32>
      %cst_27 = arith.constant 0.000000e+00 : f32
      %35 = vector.broadcast %cst_27 : f32 to vector<32x128xf32>
      %36 = arith.maximumf %34, %35 : vector<32x128xf32>
      %37 = arith.truncf %36 : vector<32x128xf32> to vector<32x128xbf16>
      %c0_28 = arith.constant 0 : index
      %c0_29 = arith.constant 0 : index
      %38 = vector.load %arg5[%c0_28, %c0_29] : memref<128x128xbf16, #tpu.memory_space<vmem>>, vector<128x128xbf16>
      %cst_30 = arith.constant dense<0.000000e+00> : vector<32x128xf32>
      %39 = tpu.matmul %37, %38, %cst_30 {dimension_numbers = #tpu.dot_dimension_numbers<[1], [0], [0], [1], [0, 0, 1, 1], [], []>} : vector<32x128xbf16>, vector<128x128xbf16>, vector<32x128xf32> -> vector<32x128xf32>
      %c0_31 = arith.constant 0 : index
      %c0_32 = arith.constant 0 : index
      %40 = vector.load %arg6[%c0_31, %c0_32] : memref<1x128xf32, #tpu.memory_space<vmem>>, vector<1x128xf32>
      %41 = vector.broadcast %40 : vector<1x128xf32> to vector<32x128xf32>
      %42 = arith.addf %39, %41 : vector<32x128xf32>
      %cst_33 = arith.constant 0.000000e+00 : f32
      %43 = vector.broadcast %cst_33 : f32 to vector<32x128xf32>
      %44 = arith.maximumf %42, %43 : vector<32x128xf32>
      %45 = arith.truncf %44 : vector<32x128xf32> to vector<32x128xbf16>
      %c0_34 = arith.constant 0 : index
      %c0_35 = arith.constant 0 : index
      %46 = vector.load %arg11[%c0_34, %c0_35] : memref<32x128xbf16, #tpu.memory_space<vmem>>, vector<32x128xbf16>
      tpu.vector_store %arg11[%c0_34, %c0_35], %45 {strides = array<i32>} : memref<32x128xbf16, #tpu.memory_space<vmem>>, vector<32x128xbf16>,
      %cst_36 = arith.constant 0xFF800000 : f32
      %47 = vector.broadcast %cst_36 : f32 to vector<32x1xf32>
      %c0_37 = arith.constant 0 : index
      %c0_38 = arith.constant 0 : index
      %48 = vector.load %arg12[%c0_37, %c0_38] : memref<32x1xf32, #tpu.memory_space<vmem>>, vector<32x1xf32>
      tpu.vector_store %arg12[%c0_37, %c0_38], %47 {strides = array<i32>} : memref<32x1xf32, #tpu.memory_space<vmem>>, vector<32x1xf32>,
      %cst_39 = arith.constant 0.000000e+00 : f32
      %49 = vector.broadcast %cst_39 : f32 to vector<32x1xf32>
      %c0_40 = arith.constant 0 : index
      %c0_41 = arith.constant 0 : index
      %50 = vector.load %arg13[%c0_40, %c0_41] : memref<32x1xf32, #tpu.memory_space<vmem>>, vector<32x1xf32>
      tpu.vector_store %arg13[%c0_40, %c0_41], %49 {strides = array<i32>} : memref<32x1xf32, #tpu.memory_space<vmem>>, vector<32x1xf32>,
    } else {
    }
    %c0 = arith.constant 0 : index
    %c0_1 = arith.constant 0 : index
    %3 = vector.load %arg11[%c0, %c0_1] : memref<32x128xbf16, #tpu.memory_space<vmem>>, vector<32x128xbf16>
    %c0_2 = arith.constant 0 : index
    %c0_3 = arith.constant 0 : index
    %4 = vector.load %arg7[%c0_2, %c0_3] : memref<128x512xbf16, #tpu.memory_space<vmem>>, vector<128x512xbf16>
    %cst = arith.constant dense<0.000000e+00> : vector<32x512xf32>
    %5 = tpu.matmul %3, %4, %cst {dimension_numbers = #tpu.dot_dimension_numbers<[1], [0], [0], [1], [0, 0, 1, 1], [], []>} : vector<32x128xbf16>, vector<128x512xbf16>, vector<32x512xf32> -> vector<32x512xf32>
    %c0_4 = arith.constant 0 : index
    %c0_5 = arith.constant 0 : index
    %6 = vector.load %arg8[%c0_4, %c0_5] : memref<1x512xf32, #tpu.memory_space<vmem>>, vector<1x512xf32>
    %7 = vector.broadcast %6 : vector<1x512xf32> to vector<32x512xf32>
    %8 = arith.addf %5, %7 : vector<32x512xf32>
    %c0_6 = arith.constant 0 : index
    %c0_7 = arith.constant 0 : index
    %9 = vector.load %arg9[%c0_6, %c0_7] : memref<32x512xf32, #tpu.memory_space<vmem>>, vector<32x512xf32>
    tpu.vector_store %arg9[%c0_6, %c0_7], %8 {strides = array<i32>} : memref<32x512xf32, #tpu.memory_space<vmem>>, vector<32x512xf32>,
    %c0_8 = arith.constant 0 : index
    %c0_9 = arith.constant 0 : index
    %10 = vector.load %arg12[%c0_8, %c0_9] : memref<32x1xf32, #tpu.memory_space<vmem>>, vector<32x1xf32>
    %cst_10 = arith.constant dense<0xFF800000> : vector<32xf32>
    %11 = vector.multi_reduction <maximumf>, %8, %cst_10 [1] : vector<32x512xf32> to vector<32xf32>
    %12 = vector.shape_cast %11 : vector<32xf32> to vector<32x1xf32>
    %13 = arith.maximumf %10, %12 : vector<32x1xf32>
    %c0_11 = arith.constant 0 : index
    %c0_12 = arith.constant 0 : index
    %14 = vector.load %arg13[%c0_11, %c0_12] : memref<32x1xf32, #tpu.memory_space<vmem>>, vector<32x1xf32>
    %15 = arith.subf %10, %13 : vector<32x1xf32>
    %16 = math.exp %15 : vector<32x1xf32>
    %17 = arith.mulf %14, %16 : vector<32x1xf32>
    %18 = vector.broadcast %13 : vector<32x1xf32> to vector<32x512xf32>
    %19 = arith.subf %8, %18 : vector<32x512xf32>
    %20 = math.exp %19 : vector<32x512xf32>
    %cst_13 = arith.constant dense<0.000000e+00> : vector<32xf32>
    %21 = vector.multi_reduction <add>, %20, %cst_13 [1] : vector<32x512xf32> to vector<32xf32>
    %22 = vector.shape_cast %21 : vector<32xf32> to vector<32x1xf32>
    %23 = arith.addf %17, %22 : vector<32x1xf32>
    %c0_14 = arith.constant 0 : index
    %c0_15 = arith.constant 0 : index
    %24 = vector.load %arg13[%c0_14, %c0_15] : memref<32x1xf32, #tpu.memory_space<vmem>>, vector<32x1xf32>
    tpu.vector_store %arg13[%c0_14, %c0_15], %23 {strides = array<i32>} : memref<32x1xf32, #tpu.memory_space<vmem>>, vector<32x1xf32>,
    %c0_16 = arith.constant 0 : index
    %c0_17 = arith.constant 0 : index
    %25 = vector.load %arg12[%c0_16, %c0_17] : memref<32x1xf32, #tpu.memory_space<vmem>>, vector<32x1xf32>
    tpu.vector_store %arg12[%c0_16, %c0_17], %13 {strides = array<i32>} : memref<32x1xf32, #tpu.memory_space<vmem>>, vector<32x1xf32>,
    %c0_i32_18 = arith.constant 0 : i32
    %26 = arith.cmpi eq, %arg1, %c0_i32_18 : i32
    %27 = arith.extui %26 : i1 to i32
    %c0_i32_19 = arith.constant 0 : i32
    %28 = arith.cmpi ne, %27, %c0_i32_19 : i32
    scf.if %28 {
      %c0_20 = arith.constant 0 : index
      %c0_21 = arith.constant 0 : index
      %29 = vector.load %arg12[%c0_20, %c0_21] : memref<32x1xf32, #tpu.memory_space<vmem>>, vector<32x1xf32>
      %c0_22 = arith.constant 0 : index
      %c0_23 = arith.constant 0 : index
      %30 = vector.load %arg13[%c0_22, %c0_23] : memref<32x1xf32, #tpu.memory_space<vmem>>, vector<32x1xf32>
      %31 = math.log %30 : vector<32x1xf32>
      %32 = arith.addf %29, %31 : vector<32x1xf32>
      %c0_24 = arith.constant 0 : index
      %c0_25 = arith.constant 0 : index
      %33 = vector.load %arg10[%c0_24, %c0_25] : memref<32x1xf32, #tpu.memory_space<vmem>>, vector<32x1xf32>
      tpu.vector_store %arg10[%c0_24, %c0_25], %32 {strides = array<i32>} : memref<32x1xf32, #tpu.memory_space<vmem>>, vector<32x1xf32>,
    } else {
    }
    return
  }
  func.func @transform_0(%arg0: i32, %arg1: i32) -> (i32, i32) {
    %c0_i32 = arith.constant 0 : i32
    %c0_i32_0 = arith.constant 0 : i32
    return %arg0, %c0_i32 : i32, i32
  }
  func.func @transform_1(%arg0: i32, %arg1: i32) -> (i32, i32) {
    %c0_i32 = arith.constant 0 : i32
    %c0_i32_0 = arith.constant 0 : i32
    %c0_i32_1 = arith.constant 0 : i32
    return %c0_i32, %c0_i32_0 : i32, i32
  }
  func.func @transform_2(%arg0: i32, %arg1: i32) -> (i32, i32) {
    %c0_i32 = arith.constant 0 : i32
    %c0_i32_0 = arith.constant 0 : i32
    %c0_i32_1 = arith.constant 0 : i32
    return %c0_i32, %c0_i32_0 : i32, i32
  }
  func.func @transform_3(%arg0: i32, %arg1: i32) -> (i32, i32) {
    %c0_i32 = arith.constant 0 : i32
    %c0_i32_0 = arith.constant 0 : i32
    %c0_i32_1 = arith.constant 0 : i32
    return %c0_i32, %c0_i32_0 : i32, i32
  }
  func.func @transform_4(%arg0: i32, %arg1: i32) -> (i32, i32) {
    %c0_i32 = arith.constant 0 : i32
    %c0_i32_0 = arith.constant 0 : i32
    %c0_i32_1 = arith.constant 0 : i32
    return %c0_i32, %c0_i32_0 : i32, i32
  }
  func.func @transform_5(%arg0: i32, %arg1: i32) -> (i32, i32) {
    %c0_i32 = arith.constant 0 : i32
    %c0_i32_0 = arith.constant 0 : i32
    return %c0_i32, %arg1 : i32, i32
  }
  func.func @transform_6(%arg0: i32, %arg1: i32) -> (i32, i32) {
    %c0_i32 = arith.constant 0 : i32
    %c0_i32_0 = arith.constant 0 : i32
    return %c0_i32, %arg1 : i32, i32
  }
  func.func @transform_7(%arg0: i32, %arg1: i32) -> (i32, i32) {
    %c0_i32 = arith.constant 0 : i32
    return %arg0, %arg1 : i32, i32
  }
  func.func @transform_8(%arg0: i32, %arg1: i32) -> (i32, i32) {
    %c0_i32 = arith.constant 0 : i32
    %c0_i32_0 = arith.constant 0 : i32
    return %arg0, %c0_i32 : i32, i32
  }
}

</mosaic_0001>

<bundles_post_ra>
// kernel: neural_language_model_forward.1
= control target key start
LH: loop header
LB: loop body
LE: loop exit
PB: predicated region body
PF: predicated region fallthrough
CT: control target
= control target key end

     0   :  { %vm319_vm0 = vcmask 7168   ;;  %s1533_s1 = inlined_call_operand.vmem [shape: bf16[128,128], index: 1, kind: input, shape index: {}]   ;;  %s1534_s0 = inlined_call_operand.vmem [shape: bf16[32,128], index: 0, kind: input, shape index: {}]   ;;  %s1535_s3 = inlined_call_operand.vmem [shape: bf16[128,128], index: 3, kind: input, shape index: {}]   ;;  %s1536_s5 = inlined_call_operand.vmem [shape: bf16[128,512], index: 5, kind: input, shape index: {}]   ;;  %s1537_s2 = inlined_call_operand.vmem [shape: f32[1,128], index: 2, kind: input, shape index: {}]   ;;  %s1538_s4 = inlined_call_operand.vmem [shape: f32[1,128], index: 4, kind: input, shape index: {}]   ;;  %s1539_s6 = inlined_call_operand.vmem [shape: f32[1,512], index: 6, kind: input, shape index: {}]   ;;  %s1540_s7 = inlined_call_operand.vmem [shape: f32[32,512], index: 7, kind: output, shape index: {0}]   ;;  %s1541_s8 = inlined_call_operand.vmem [shape: f32[32,1], index: 8, kind: output, shape index: {1}]  }
   0x1   :  { %v1002_v0 = vld [vmem:[%s1533_s1 + $0x38] sm:$0xff]   ;;  %v1003_v1 = vld [vmem:[%s1533_s1 + $0x30] sm:$0xff]   ;;  %v1004_v2 = vld [vmem:[%s1533_s1 + $0x28] sm:$0xff]  }
   0x2   :  { %957 = vmatprep.subr.bf16.mxu0 %v1002_v0  ;;  %v1005_v3 = vld [vmem:[%s1533_s1 + $0x20] sm:$0xff]   ;;  %v1012_v5 = vld [vmem:[%s1535_s3 + $0x38] sm:$0xff]   ;;  %v1013_v6 = vld [vmem:[%s1535_s3 + $0x30] sm:$0xff]  }
   0x3   :  { %958 = vmatpush3.bf16.msra.mxu0 %v1002_v0  ;;  %v1010_v4 = vld [vmem:[%s1534_s0] sm:$0xff]   ;;  %v1006_v7 = vld [vmem:[%s1533_s1 + $0x18] sm:$0xff]   ;;  %977 = vmatprep.subr.bf16.mxu1 %v1012_v5  ;;  %v1007_v8 = vld [vmem:[%s1533_s1 + $0x10] sm:$0xff]  }
   0x4   :  { %959 = vmatprep.subr.bf16.mxu0 %v1003_v1  ;;  %973 = vmatprep.mubr.bf16.mxu0 %v1010_v4  ;;  %v1014_v9 = vld [vmem:[%s1535_s3 + $0x28] sm:$0xff]   ;;  %v1015_v10 = vld [vmem:[%s1535_s3 + $0x20] sm:$0xff]   ;;  %v1016_v12 = vld [vmem:[%s1535_s3 + $0x18] sm:$0xff]  }
   0x5   :  { %978 = vmatpush3.bf16.msra.mxu1 %v1012_v5  ;;  %v1008_v11 = vld [vmem:[%s1533_s1 + $0x8] sm:$0xff]   ;;  %v1009_v13 = vld [vmem:[%s1533_s1] sm:$0xff]   ;;  %v1017_v15 = vld [vmem:[%s1535_s3 + $0x10] sm:$0xff]  }
   0x6   :  { %979 = vmatprep.subr.bf16.mxu1 %v1013_v6  ;;  %v1011_v14 = vld [vmem:[%s1534_s0 + $0x8] sm:$0xff]   ;;  %v1019_v17 = vld [vmem:[%s1535_s3] sm:$0xff]  }
   0x7   :  { %960 = vmatpush3.bf16.msra.mxu0 %v1003_v1  ;;  %v1018_v16 = vld [vmem:[%s1535_s3 + $0x8] sm:$0xff]   ;;  %v1020_v18 = vld [vmem:[%s1536_s5 + $0xe0] ss:$16 sps:$4 sm:$0xff]   ;;  %v1022_v19 = vld [vmem:[%s1536_s5 + $0xe4] ss:$16 sps:$4 sm:$0xff]   ;;  %v1118_v1 = vmov 0  }
   0x8   :  { %961 = vmatprep.subr.bf16.mxu0 %v1004_v2  ;;  %v1025_v20 = vld [vmem:[%s1536_s5 + $0xec] ss:$16 sps:$4 sm:$0xff]   ;;  %v1028_v21 = vld [vmem:[%s1536_s5 + $0xc4] ss:$16 sps:$4 sm:$0xff]   ;;  %v1026_v22 = vld [vmem:[%s1536_s5 + $0xc0] ss:$16 sps:$4 sm:$0xff]   ;;  %1000 = vset.pattern.permute.xlu0 %v1118_v1 }
   0x9   :  { %980 = vmatpush3.bf16.msra.mxu1 %v1013_v6  ;;  %v1034_v23 = vld [vmem:[%s1536_s5 + $0xa4] ss:$16 sps:$4 sm:$0xff]   ;;  %v1032_v24 = vld [vmem:[%s1536_s5 + $0xa0] ss:$16 sps:$4 sm:$0xff]   ;;  %v1023_v39 = vld [vmem:[%s1536_s5 + $0xe8] ss:$16 sps:$4 sm:$0xff]   ;;  %1001 = vset.pattern.permute.xlu1 %v1118_v1 }
   0xa   :  { %981 = vmatprep.subr.bf16.mxu1 %v1014_v9  ;;  %v864_v27 = vld [vmem:[%s1537_s2] ss:$0 sm:$0xff]  ;;  %v1031_v41 = vld [vmem:[%s1536_s5 + $0xcc] ss:$16 sps:$4 sm:$0xff]   ;;  %v1029_v42 = vld [vmem:[%s1536_s5 + $0xc8] ss:$16 sps:$4 sm:$0xff]  }
   0xb   :  { %962 = vmatpush3.bf16.msra.mxu0 %v1004_v2  ;;  %v1037_v43 = vld [vmem:[%s1536_s5 + $0xac] ss:$16 sps:$4 sm:$0xff]   ;;  %v1035_v44 = vld [vmem:[%s1536_s5 + $0xa8] ss:$16 sps:$4 sm:$0xff]   ;;  %v1040_v45 = vld [vmem:[%s1536_s5 + $0x84] ss:$16 sps:$4 sm:$0xff]  }
   0xc   :  { %963 = vmatprep.subr.bf16.mxu0 %v1005_v3  ;;  %v1043_v46 = vld [vmem:[%s1536_s5 + $0x8c] ss:$16 sps:$4 sm:$0xff]   ;;  %v1038_v47 = vld [vmem:[%s1536_s5 + $0x80] ss:$16 sps:$4 sm:$0xff]   ;;  %v1041_v48 = vld [vmem:[%s1536_s5 + $0x88] ss:$16 sps:$4 sm:$0xff]  }
   0xd   :  { %982 = vmatpush3.bf16.msra.mxu1 %v1014_v9  ;;  %v1046_v49 = vld [vmem:[%s1536_s5 + $0x64] ss:$16 sps:$4 sm:$0xff]   ;;  %v1049_v50 = vld [vmem:[%s1536_s5 + $0x6c] ss:$16 sps:$4 sm:$0xff]   ;;  %v1044_v51 = vld [vmem:[%s1536_s5 + $0x60] ss:$16 sps:$4 sm:$0xff]  }
   0xe   :  { %983 = vmatprep.subr.bf16.mxu1 %v1015_v10  ;;  %v1047_v52 = vld [vmem:[%s1536_s5 + $0x68] ss:$16 sps:$4 sm:$0xff]   ;;  %v1052_v53 = vld [vmem:[%s1536_s5 + $0x44] ss:$16 sps:$4 sm:$0xff]   ;;  %v1055_v54 = vld [vmem:[%s1536_s5 + $0x4c] ss:$16 sps:$4 sm:$0xff]  }
   0xf   :  { %964 = vmatpush3.bf16.msra.mxu0 %v1005_v3  ;;  %v1050_v55 = vld [vmem:[%s1536_s5 + $0x40] ss:$16 sps:$4 sm:$0xff]   ;;  %v1053_v56 = vld [vmem:[%s1536_s5 + $0x48] ss:$16 sps:$4 sm:$0xff]   ;;  %v1058_v57 = vld [vmem:[%s1536_s5 + $0x24] ss:$16 sps:$4 sm:$0xff]  }
  0x10   :  { %965 = vmatprep.subr.bf16.mxu0 %v1006_v7  ;;  %v1061_v58 = vld [vmem:[%s1536_s5 + $0x2c] ss:$16 sps:$4 sm:$0xff]   ;;  %v1056_v59 = vld [vmem:[%s1536_s5 + $0x20] ss:$16 sps:$4 sm:$0xff]   ;;  %v1059_v60 = vld [vmem:[%s1536_s5 + $0x28] ss:$16 sps:$4 sm:$0xff]  }
  0x11   :  { %984 = vmatpush3.bf16.msra.mxu1 %v1015_v10  ;;  %v1064_v61 = vld [vmem:[%s1536_s5 + $0x4] ss:$16 sps:$4 sm:$0xff]   ;;  %v1067_v62 = vld [vmem:[%s1536_s5 + $0xc] ss:$16 sps:$4 sm:$0xff]   ;;  %v1062_v63 = vld [vmem:[%s1536_s5] ss:$16 sps:$4 sm:$0xff]  }
  0x12   :  { %985 = vmatprep.subr.bf16.mxu1 %v1016_v12  ;;  %v1065_v0 = vld [vmem:[%s1536_s5 + $0x8] ss:$16 sps:$4 sm:$0xff]   ;;  %v875_v3 = vld [vmem:[%s1538_s4] ss:$0 sm:$0xff] }
  0x13   :  { %966 = vmatpush3.bf16.msra.mxu0 %v1006_v7 }
  0x14   :  { %967 = vmatprep.subr.bf16.mxu0 %v1007_v8 }
  0x15   :  { %986 = vmatpush3.bf16.msra.mxu1 %v1016_v12 }
  0x16   :  { %987 = vmatprep.subr.bf16.mxu1 %v1017_v15 }
  0x17   :  { %968 = vmatpush3.bf16.msra.mxu0 %v1007_v8 }
  0x18   :  { %969 = vmatprep.subr.bf16.mxu0 %v1008_v11 }
  0x19   :  { %988 = vmatpush3.bf16.msra.mxu1 %v1017_v15 }
  0x1a   :  { %989 = vmatprep.subr.bf16.mxu1 %v1018_v16 }
  0x1b   :  { %970 = vmatpush3.bf16.msra.mxu0 %v1008_v11 }
  0x1c   :  { %971 = vmatprep.subr.bf16.mxu0 %v1009_v13 }
  0x1d   :  { %990 = vmatpush3.bf16.msra.mxu1 %v1018_v16 }
  0x1e   :  { %991 = vmatprep.subr.bf16.mxu1 %v1019_v17 }
  0x1f   :  { %972 = vmatpush3.bf16.msra.mxu0 %v1009_v13 }
  0x20   :  { %558 = vmatprep.subr.bf16.mxu0 %v1022_v19  ;;  %v1119_v19 = vmov -inf  }
  0x21   :  { %992 = vmatpush3.bf16.msra.mxu1 %v1019_v17  ;;  %320 = vst.msk [vmem:[#allocation3] sm:$0xff] %vm319_vm0, %v1119_v19  ;;  %321 = vst.msk [vmem:[#allocation3 + $0x8] sm:$0xff] %vm319_vm0, %v1119_v19 }
  0x22   :  { %974 = vmatmul.mubr.bf16.vlgmr.msra.gmra.mxu0 %v1011_v14  ;;  %611 = vmatprep.subr.bf16.mxu1 %v1025_v20  ;;  %322 = vst.msk [vmem:[#allocation3 + $0x10] sm:$0xff] %vm319_vm0, %v1119_v19  ;;  %323 = vst.msk [vmem:[#allocation3 + $0x18] sm:$0xff] %vm319_vm0, %v1119_v19  ;;  %v366_v20 = vlaneseq }
  0x23   :  { %559 = vmatpush1.bf16.msra.mxu0 %v1020_v18  ;;  %590 = vmatprep.mubr.bf16.mxu0 %v1118_v1 }
  0x24   :  { %560 = vmatprep.subr.bf16.mxu0 %v1028_v21  ;;  %v367_v21 = vshrl.u32 %v366_v20, 7 }
  0x27   :  { %561 = vmatpush1.bf16.msra.mxu0 %v1026_v22  ;;  %v368_v22 = vsub.s32 0, %v367_v21 }
  0x28   :  { %562 = vmatprep.subr.bf16.mxu0 %v1034_v23  ;;  %v376_v23 = vsub.s32 2, %v367_v21 }
  0x29   :  { %v1460_v19 = vld [vmem:[#allocation3 + $0x10] sm:$0xff] }
  0x2b   :  { %563 = vmatpush1.bf16.msra.mxu0 %v1032_v24  ;;  %v364_v24 = vld [vmem:[%s1539_s6] sm:$0xf] }
  0x2c   :  { %564 = vmatprep.subr.bf16.mxu0 %v1040_v45 }
  0x2f   :  { %565 = vmatpush1.bf16.msra.mxu0 %v1038_v47 }
  0x30   :  { %566 = vmatprep.subr.bf16.mxu0 %v1046_v49 }
  0x33   :  { %567 = vmatpush1.bf16.msra.mxu0 %v1044_v51 }
  0x34   :  { %568 = vmatprep.subr.bf16.mxu0 %v1052_v53 }
  0x37   :  { %569 = vmatpush1.bf16.msra.mxu0 %v1050_v55 }
  0x38   :  { %570 = vmatprep.subr.bf16.mxu0 %v1058_v57 }
  0x3b   :  { %571 = vmatpush1.bf16.msra.mxu0 %v1056_v59 }
  0x3c   :  { %572 = vmatprep.subr.bf16.mxu0 %v1064_v61 }
  0x3f   :  { %573 = vmatpush1.bf16.msra.mxu0 %v1062_v63 }
  0xe2   :  { %v975_v25 = vpop.f32.mrf.mxu0 }
  0xe3   :  { %v163_v31 = vadd.f32 %v975_v25, %v864_v27  ;;  %v372_v25 = vsub.s32 1, %v367_v21 }
  0xe4   :  { %v154_v26 = vpop.f32.mrf.mxu0 }
  0xe5   :  { %v155_v29 = vadd.f32 %v864_v27, %v154_v26  ;;  %v171_v37 = vmax.f32 %v163_v31, 0.0  ;;  %v380_v26 = vsub.s32 3, %v367_v21 }
  0xe6   :  { %v976_v28 = vpop.f32.mrf.mxu0 }
  0xe7   :  { %v166_v30 = vadd.f32 %v976_v28, %v864_v27  ;;  %v169_v35 = vmax.f32 %v155_v29, 0.0  ;;  %v377_v28 = vrot.slane %v364_v24, %v376_v23  ;;  %v373_v29 = vrot.slane %v364_v24, %v372_v25  ;;  %v1470_v23 = vld [vmem:[#allocation3 + $0x18] sm:$0xff] }
  0xe8   :  { %v157_v32 = vpop.f32.mrf.mxu0 }
  0xe9   :  { %v158_v33 = vadd.f32 %v864_v27, %v157_v32  ;;  %v172_v34 = vmax.f32 %v166_v30, 0.0  ;;  %v369_v27 = vrot.slane %v364_v24, %v368_v22  ;;  %v381_v30 = vrot.slane %v364_v24, %v380_v26 }
  0xeb   :  { %v170_v36 = vmax.f32 %v158_v33, 0.0  ;;  %v174_v40 = vpack.c.bf16 %v172_v34, %v171_v37 }
  0xed   :  { %v173_v38 = vpack.c.bf16 %v170_v36, %v169_v35 }
  0xef   :  { %993 = vmatprep.mubr.bf16.mxu1 %v173_v38 }
  0xf0   :  { %994 = vmatmul.mubr.bf16.vlgmr.msra.gmra.mxu1 %v174_v40 }
  0xf1   :  { %612 = vmatpush1.bf16.msra.mxu1 %v1023_v39  ;;  %643 = vmatprep.mubr.bf16.mxu1 %v1118_v1 }
  0xf2   :  { %613 = vmatprep.subr.bf16.mxu1 %v1031_v41 }
  0xf5   :  { %614 = vmatpush1.bf16.msra.mxu1 %v1029_v42 }
  0xf6   :  { %615 = vmatprep.subr.bf16.mxu1 %v1037_v43 }
  0xf9   :  { %616 = vmatpush1.bf16.msra.mxu1 %v1035_v44 }
  0xfa   :  { %617 = vmatprep.subr.bf16.mxu1 %v1043_v46 }
  0xfd   :  { %618 = vmatpush1.bf16.msra.mxu1 %v1041_v48 }
  0xfe   :  { %619 = vmatprep.subr.bf16.mxu1 %v1049_v50 }
 0x101   :  { %620 = vmatpush1.bf16.msra.mxu1 %v1047_v52 }
 0x102   :  { %621 = vmatprep.subr.bf16.mxu1 %v1055_v54 }
 0x105   :  { %622 = vmatpush1.bf16.msra.mxu1 %v1053_v56 }
 0x106   :  { %623 = vmatprep.subr.bf16.mxu1 %v1061_v58 }
 0x109   :  { %624 = vmatpush1.bf16.msra.mxu1 %v1059_v60 }
 0x10a   :  { %625 = vmatprep.subr.bf16.mxu1 %v1067_v62 }
 0x10d   :  { %626 = vmatpush1.bf16.msra.mxu1 %v1065_v0 }
 0x1b0   :  { %v995_v2 = vpop.f32.mrf.mxu1 }
 0x1b1   :  { %v289_v5 = vadd.f32 %v995_v2, %v875_v3 }
 0x1b2   :  { %v280_v4 = vpop.f32.mrf.mxu1 }
 0x1b3   :  { %v281_v7 = vadd.f32 %v875_v3, %v280_v4  ;;  %v297_v10 = vmax.f32 %v289_v5, 0.0 }
 0x1b4   :  { %v996_v6 = vpop.f32.mrf.mxu1 }
 0x1b5   :  { %v292_v8 = vadd.f32 %v996_v6, %v875_v3  ;;  %v295_v13 = vmax.f32 %v281_v7, 0.0 }
 0x1b6   :  { %v283_v9 = vpop.f32.mrf.mxu1 }
 0x1b7   :  { %v298_v11 = vmax.f32 %v292_v8, 0.0  ;;  %v284_v12 = vadd.f32 %v875_v3, %v283_v9 }
 0x1b9   :  { %v934_v14 = vpack.c.bf16 %v298_v11, %v297_v10  ;;  %v296_v15 = vmax.f32 %v284_v12, 0.0  ;;  %v1120_v11 = vmov 0.0   ;;  %v1445_v12 = vld [vmem:[#allocation3] sm:$0xff] }
 0x1ba   :  { %324 = vst.msk [vmem:[#allocation4] sm:$0xff] %vm319_vm0, %v1120_v11  ;;  %325 = vst.msk [vmem:[#allocation4 + $0x8] sm:$0xff] %vm319_vm0, %v1120_v11 }
 0x1bb   :  { %936 = vst [vmem:[#allocation2 + $0x8] sm:$0xff] %v934_v14   ;;  %v929_v16 = vpack.c.bf16 %v296_v15, %v295_v13  ;;  %326 = vst.msk [vmem:[#allocation4 + $0x10] sm:$0xff] %vm319_vm0, %v1120_v11  ;;  %v1450_v15 = vld [vmem:[#allocation3 + $0x8] sm:$0xff] }
 0x1bc   :  { %327 = vst.msk [vmem:[#allocation4 + $0x18] sm:$0xff] %vm319_vm0, %v1120_v11 }
 0x1bd   :  { %930 = vst [vmem:[#allocation2] sm:$0xff] %v929_v16  }
 0x1c2   :  { %v1069_v18 = vld [vmem:[#allocation2 + $0x8] sm:$0xff]  }
 0x1c4   :  { %v1068_v17 = vld [vmem:[#allocation2] sm:$0xff]  }
 0x1c5   :  { %591 = vmatmul.mubr.bf16.vlgmr.msra.gmra.mxu0 %v1068_v17  ;;  %644 = vmatmul.mubr.bf16.vlgmr.msra.gmra.mxu1 %v1068_v17 }
 0x1c6   :  { %600 = vmatprep.mubr.bf16.mxu0 %v1118_v1  ;;  %653 = vmatprep.mubr.bf16.mxu1 %v1118_v1 }
 0x1cd   :  { %601 = vmatmul.mubr.bf16.gmra.mxu0 %v1069_v18  ;;  %654 = vmatmul.mubr.bf16.gmra.mxu1 %v1069_v18 }
 0x285   :  { %v592_v31 = vpop.f32.mrf.mxu0  ;;  %v645_v32 = vpop.f32.mrf.mxu1 }
 0x286   :  { %v1329_v33 = vadd.f32 %v592_v31, %v369_v27  ;;  %v1331_v34 = vadd.f32 %v645_v32, %v377_v28 }
 0x287   :  { %v594_v35 = vpop.f32.mrf.mxu0  ;;  %v647_v36 = vpop.f32.mrf.mxu1 }
 0x288   :  { %664 = vst [vmem:[%s1540_s7] sm:$0xff] %v1329_v33  ;;  %666 = vst [vmem:[%s1540_s7 + $0x10] sm:$0xff] %v1331_v34  ;;  %v1341_v37 = vadd.f32 %v594_v35, %v373_v29  ;;  %v1343_v38 = vadd.f32 %v647_v36, %v381_v30 }
 0x289   :  { %v596_v39 = vpop.f32.mrf.mxu0  ;;  %v649_v40 = vpop.f32.mrf.mxu1 }
 0x28a   :  { %665 = vst [vmem:[%s1540_s7 + $0x8] sm:$0xff] %v1341_v37  ;;  %667 = vst [vmem:[%s1540_s7 + $0x18] sm:$0xff] %v1343_v38  ;;  %v1353_v41 = vadd.f32 %v596_v39, %v369_v27  ;;  %v1355_v42 = vadd.f32 %v649_v40, %v377_v28  ;;  %v684_v43 = vmax.f32 %v1329_v33, %v1341_v37 }
 0x28b   :  { %v598_v44 = vpop.f32.mrf.mxu0  ;;  %v651_v45 = vpop.f32.mrf.mxu1 }
 0x28c   :  { %668 = vst [vmem:[%s1540_s7 + $0x20] sm:$0xff] %v1353_v41  ;;  %670 = vst [vmem:[%s1540_s7 + $0x30] sm:$0xff] %v1355_v42  ;;  %v1367_v46 = vadd.f32 %v598_v44, %v373_v29  ;;  %v1369_v47 = vadd.f32 %v651_v45, %v381_v30  ;;  %v685_v48 = vmax.f32 %v684_v43, %v1331_v34 }
 0x28d   :  { %v602_v49 = vpop.f32.mrf.mxu0  ;;  %v655_v50 = vpop.f32.mrf.mxu1 }
 0x28e   :  { %669 = vst [vmem:[%s1540_s7 + $0x28] sm:$0xff] %v1367_v46  ;;  %v689_v51 = vmax.f32 %v1353_v41, %v1367_v46  ;;  %671 = vst [vmem:[%s1540_s7 + $0x38] sm:$0xff] %v1369_v47  ;;  %v1382_v52 = vadd.f32 %v602_v49, %v369_v27  ;;  %v1384_v53 = vadd.f32 %v655_v50, %v377_v28 }
 0x28f   :  { %v686_v54 = vmax.f32 %v685_v48, %v1343_v38  ;;  %v604_v55 = vpop.f32.mrf.mxu0  ;;  %v657_v56 = vpop.f32.mrf.mxu1 }
 0x290   :  { %672 = vst [vmem:[%s1540_s7 + $0x40] sm:$0xff] %v1382_v52  ;;  %674 = vst [vmem:[%s1540_s7 + $0x50] sm:$0xff] %v1384_v53  ;;  %v1395_v57 = vadd.f32 %v604_v55, %v373_v29  ;;  %v1397_v58 = vadd.f32 %v657_v56, %v381_v30  ;;  %v690_v59 = vmax.f32 %v689_v51, %v1355_v42 }
 0x291   :  { %687 = vmax.xlane.f32.xlu0 %v686_v54  ;;  %v606_v60 = vpop.f32.mrf.mxu0  ;;  %v659_v61 = vpop.f32.mrf.mxu1 }
 0x292   :  { %673 = vst [vmem:[%s1540_s7 + $0x48] sm:$0xff] %v1395_v57  ;;  %675 = vst [vmem:[%s1540_s7 + $0x58] sm:$0xff] %v1397_v58  ;;  %v1408_v62 = vadd.f32 %v606_v60, %v369_v27  ;;  %v1410_v63 = vadd.f32 %v659_v61, %v377_v28  ;;  %v691_v0 = vmax.f32 %v690_v59, %v1369_v47 }
 0x293   :  { %v694_v1 = vmax.f32 %v1382_v52, %v1395_v57  ;;  %v608_v2 = vpop.f32.mrf.mxu0  ;;  %v661_v3 = vpop.f32.mrf.mxu1 }
 0x294   :  { %676 = vst [vmem:[%s1540_s7 + $0x60] sm:$0xff] %v1408_v62  ;;  %678 = vst [vmem:[%s1540_s7 + $0x70] sm:$0xff] %v1410_v63  ;;  %v1423_v4 = vadd.f32 %v608_v2, %v373_v29  ;;  %v1425_v5 = vadd.f32 %v661_v3, %v381_v30 }
 0x295   :  { %692 = vmax.xlane.f32.xlu0 %v691_v0  ;;  %v695_v6 = vmax.f32 %v694_v1, %v1384_v53 }
 0x296   :  { %677 = vst [vmem:[%s1540_s7 + $0x68] sm:$0xff] %v1423_v4  ;;  %v699_v7 = vmax.f32 %v1408_v62, %v1423_v4  ;;  %679 = vst [vmem:[%s1540_s7 + $0x78] sm:$0xff] %v1425_v5 }
 0x297   :  { %v696_v8 = vmax.f32 %v695_v6, %v1397_v58 }
 0x298   :  { %v700_v9 = vmax.f32 %v699_v7, %v1410_v63 }
 0x299   :  { %697 = vmax.xlane.f32.xlu1 %v696_v8 }
 0x29a   :  { %v701_v10 = vmax.f32 %v700_v9, %v1425_v5 }
 0x29d   :  { %702 = vmax.xlane.f32.xlu1 %v701_v10 }
 0x31a   :  { %v688_v13 = vpop.xlane.xlu0 %687 }
 0x31b   :  { %v1448_v14 = vmax.f32 %v1445_v12, %v688_v13 }
 0x31d   :  { %v712_v16 = vsub.f32 %v1445_v12, %v1448_v14  ;;  %825 = vst.msk [vmem:[#allocation3] sm:$0xff] %vm319_vm0, %v1448_v14  ;;  %730 = vperm.xlu0 %1000, %v1448_v14  }
 0x31e   :  { %v693_v17 = vpop.xlane.xlu0 %692 }
 0x31f   :  { %v1458_v18 = vmax.f32 %v1450_v15, %v693_v17 }
 0x321   :  { %v713_v20 = vsub.f32 %v1450_v15, %v1458_v18  ;;  %826 = vst.msk [vmem:[#allocation3 + $0x8] sm:$0xff] %vm319_vm0, %v1458_v18  ;;  %735 = vperm.xlu1 %1001, %v1458_v18  }
 0x322   :  { %v698_v21 = vpop.xlane.xlu1 %697 }
 0x323   :  { %v1468_v22 = vmax.f32 %v1460_v19, %v698_v21 }
 0x325   :  { %v714_v24 = vsub.f32 %v1460_v19, %v1468_v22  ;;  %827 = vst.msk [vmem:[#allocation3 + $0x10] sm:$0xff] %vm319_vm0, %v1468_v22  ;;  %740 = vperm.xlu1 %1001, %v1468_v22   ;;  %v710_v19 = vld [vmem:[#allocation4 + $0x10] sm:$0xff] }
 0x326   :  { %v703_v25 = vpop.xlane.xlu1 %702 }
 0x327   :  { %v1478_v26 = vmax.f32 %v1470_v23, %v703_v25 }
 0x329   :  { %v715_v27 = vsub.f32 %v1470_v23, %v1478_v26  ;;  %828 = vst.msk [vmem:[#allocation3 + $0x18] sm:$0xff] %vm319_vm0, %v1478_v26  ;;  %745 = vperm.xlu1 %1001, %v1478_v26  }
 0x398   :  { %v731_v28 = vpop.permute.xlu0 %730 }
 0x399   :  { %v748_v29 = vsub.f32 %v1329_v33, %v731_v28  ;;  %v749_v30 = vsub.f32 %v1341_v37, %v731_v28  ;;  %v750_v31 = vsub.f32 %v1331_v34, %v731_v28  ;;  %v751_v32 = vsub.f32 %v1343_v38, %v731_v28 }
 0x39b   :  { %v764_v35 = vmul.f32 1.442695, %v748_v29  ;;  %v766_v36 = vmul.f32 1.442695, %v749_v30  ;;  %v768_v39 = vmul.f32 1.442695, %v750_v31 }
 0x39c   :  { %v770_v40 = vmul.f32 1.442695, %v751_v32  ;;  %v736_v43 = vpop.permute.xlu1 %735 }
 0x39d   :  { %1070 = vpow2.f32 %v764_v35  ;;  %v752_v44 = vsub.f32 %v1353_v41, %v736_v43  ;;  %v753_v45 = vsub.f32 %v1367_v46, %v736_v43  ;;  %v754_v48 = vsub.f32 %v1355_v42, %v736_v43 }
 0x39e   :  { %1072 = vpow2.f32 %v766_v36  ;;  %v755_v33 = vsub.f32 %v1369_v47, %v736_v43 }
 0x39f   :  { %1074 = vpow2.f32 %v768_v39  ;;  %v772_v37 = vmul.f32 1.442695, %v752_v44  ;;  %v774_v34 = vmul.f32 1.442695, %v753_v45  ;;  %v776_v49 = vmul.f32 1.442695, %v754_v48 }
 0x3a0   :  { %1076 = vpow2.f32 %v770_v40  ;;  %v778_v38 = vmul.f32 1.442695, %v755_v33  ;;  %v741_v50 = vpop.permute.xlu1 %740  ;;  %v716_v48 = vmul.f32 1.442695, %v712_v16  ;;  %v718_v33 = vmul.f32 1.442695, %v713_v20 }
 0x3a1   :  { %1078 = vpow2.f32 %v772_v37  ;;  %v756_v51 = vsub.f32 %v1382_v52, %v741_v50  ;;  %v757_v54 = vsub.f32 %v1395_v57, %v741_v50  ;;  %v758_v41 = vsub.f32 %v1384_v53, %v741_v50 }
 0x3a2   :  { %1080 = vpow2.f32 %v774_v34  ;;  %v759_v42 = vsub.f32 %v1397_v58, %v741_v50  ;;  %v720_v37 = vmul.f32 1.442695, %v714_v24  ;;  %v722_v34 = vmul.f32 1.442695, %v715_v27  ;;  %v709_v50 = vld [vmem:[#allocation4 + $0x8] sm:$0xff]  ;;  %v711_v27 = vld [vmem:[#allocation4 + $0x18] sm:$0xff] }
 0x3a3   :  { %1082 = vpow2.f32 %v776_v49  ;;  %v780_v46 = vmul.f32 1.442695, %v756_v51  ;;  %v782_v47 = vmul.f32 1.442695, %v757_v54  ;;  %v784_v55 = vmul.f32 1.442695, %v758_v41 }
 0x3a4   :  { %1084 = vpow2.f32 %v778_v38  ;;  %v786_v56 = vmul.f32 1.442695, %v759_v42  ;;  %v746_v59 = vpop.permute.xlu1 %745  ;;  %v708_v38 = vld [vmem:[#allocation4] sm:$0xff] }
 0x3a5   :  { %1086 = vpow2.f32 %v780_v46  ;;  %v760_v60 = vsub.f32 %v1408_v62, %v746_v59  ;;  %v761_v61 = vsub.f32 %v1423_v4, %v746_v59  ;;  %v762_v52 = vsub.f32 %v1410_v63, %v746_v59 }
 0x3a6   :  { %1088 = vpow2.f32 %v782_v47  ;;  %v763_v53 = vsub.f32 %v1425_v5, %v746_v59 }
 0x3a7   :  { %1090 = vpow2.f32 %v784_v55  ;;  %v788_v57 = vmul.f32 1.442695, %v760_v60  ;;  %v790_v58 = vmul.f32 1.442695, %v761_v61  ;;  %v792_v0 = vmul.f32 1.442695, %v762_v52 }
 0x3a8   :  { %1092 = vpow2.f32 %v786_v56  ;;  %v794_v2 = vmul.f32 1.442695, %v763_v53  ;;  %v832_v52 = vld [vmem:[#allocation3] sm:$0xff] }
 0x3a9   :  { %1094 = vpow2.f32 %v788_v57 }
 0x3aa   :  { %v1071_v1 = vpop.eup %1070  ;;  %1096 = vpow2.f32 %v790_v58 }
 0x3ab   :  { %v1073_v3 = vpop.eup %1072  ;;  %1098 = vpow2.f32 %v792_v0  ;;  %v833_v0 = vld [vmem:[#allocation3 + $0x8] sm:$0xff] }
 0x3ac   :  { %v1075_v6 = vpop.eup %1074  ;;  %v796_v62 = vadd.f32 %v1073_v3, %v1071_v1  ;;  %1100 = vpow2.f32 %v794_v2 }
 0x3ad   :  { %v1077_v7 = vpop.eup %1076  ;;  %1102 = vpow2.f32 %v716_v48 }
 0x3ae   :  { %v1079_v4 = vpop.eup %1078  ;;  %v797_v63 = vadd.f32 %v1075_v6, %v796_v62  ;;  %1104 = vpow2.f32 %v718_v33  ;;  %v834_v6 = vld [vmem:[#allocation3 + $0x10] sm:$0xff] }
 0x3af   :  { %v1081_v8 = vpop.eup %1080  ;;  %1106 = vpow2.f32 %v720_v37 }
 0x3b0   :  { %v1083_v9 = vpop.eup %1082  ;;  %v798_v5 = vadd.f32 %v1077_v7, %v797_v63  ;;  %v801_v10 = vadd.f32 %v1081_v8, %v1079_v4  ;;  %1108 = vpow2.f32 %v722_v34  ;;  %v835_v63 = vld [vmem:[#allocation3 + $0x18] sm:$0xff] }
 0x3b1   :  { %v1085_v11 = vpop.eup %1084 }
 0x3b2   :  { %v1087_v13 = vpop.eup %1086  ;;  %799 = vadd.xlane.f32.xlu1 %v798_v5  ;;  %v802_v17 = vadd.f32 %v1083_v9, %v801_v10 }
 0x3b3   :  { %v1089_v21 = vpop.eup %1088 }
 0x3b4   :  { %v1091_v25 = vpop.eup %1090  ;;  %v803_v28 = vadd.f32 %v1085_v11, %v802_v17  ;;  %v806_v29 = vadd.f32 %v1089_v21, %v1087_v13 }
 0x3b5   :  { %v1093_v30 = vpop.eup %1092 }
 0x3b6   :  { %v1095_v31 = vpop.eup %1094  ;;  %804 = vadd.xlane.f32.xlu0 %v803_v28  ;;  %v807_v32 = vadd.f32 %v1091_v25, %v806_v29 }
 0x3b7   :  { %v1097_v35 = vpop.eup %1096 }
 0x3b8   :  { %v808_v36 = vadd.f32 %v1093_v30, %v807_v32  ;;  %v811_v39 = vadd.f32 %v1097_v35, %v1095_v31  ;;  %v1099_v40 = vpop.eup %1098 }
 0x3b9   :  { %v1101_v44 = vpop.eup %1100 }
 0x3ba   :  { %809 = vadd.xlane.f32.xlu1 %v808_v36  ;;  %v812_v43 = vadd.f32 %v1099_v40, %v811_v39  ;;  %v1103_v49 = vpop.eup %1102 }
 0x3bb   :  { %v724_v12 = vmul.f32 %v1103_v49, %v708_v38  ;;  %v1105_v14 = vpop.eup %1104 }
 0x3bc   :  { %v813_v45 = vadd.f32 %v1101_v44, %v812_v43  ;;  %v725_v15 = vmul.f32 %v1105_v14, %v709_v50  ;;  %v1107_v18 = vpop.eup %1106 }
 0x3bd   :  { %v726_v24 = vmul.f32 %v1107_v18, %v710_v19  ;;  %v1109_v23 = vpop.eup %1108 }
 0x3be   :  { %814 = vadd.xlane.f32.xlu1 %v813_v45  ;;  %v727_v42 = vmul.f32 %v1109_v23, %v711_v27 }
 0x43b   :  { %v800_v16 = vpop.xlane.xlu1 %799 }
 0x43c   :  { %v816_v51 = vadd.f32 %v800_v16, %v724_v12 }
 0x43e   :  { %821 = vst.msk [vmem:[#allocation4] sm:$0xff] %vm319_vm0, %v816_v51 }
 0x43f   :  { %v805_v20 = vpop.xlane.xlu0 %804 }
 0x440   :  { %v817_v22 = vadd.f32 %v805_v20, %v725_v15 }
 0x442   :  { %822 = vst.msk [vmem:[#allocation4 + $0x8] sm:$0xff] %vm319_vm0, %v817_v22 }
 0x443   :  { %v810_v26 = vpop.xlane.xlu1 %809 }
 0x444   :  { %v818_v54 = vadd.f32 %v810_v26, %v726_v24 }
 0x445   :  { %v836_v41 = vld [vmem:[#allocation4] sm:$0xff] }
 0x446   :  { %1110 = vlog2.f32 %v836_v41  ;;  %823 = vst.msk [vmem:[#allocation4 + $0x10] sm:$0xff] %vm319_vm0, %v818_v54 }
 0x447   :  { %v815_v46 = vpop.xlane.xlu1 %814 }
 0x448   :  { %v819_v47 = vadd.f32 %v815_v46, %v727_v42 }
 0x449   :  { %v837_v55 = vld [vmem:[#allocation4 + $0x8] sm:$0xff] }
 0x44a   :  { %1112 = vlog2.f32 %v837_v55  ;;  %824 = vst.msk [vmem:[#allocation4 + $0x18] sm:$0xff] %vm319_vm0, %v819_v47 }
 0x44d   :  { %v838_v56 = vld [vmem:[#allocation4 + $0x10] sm:$0xff] }
 0x44e   :  { %1114 = vlog2.f32 %v838_v56 }
 0x451   :  { %v839_v59 = vld [vmem:[#allocation4 + $0x18] sm:$0xff] }
 0x452   :  { %1116 = vlog2.f32 %v839_v59 }
 0x453   :  { %v1111_v60 = vpop.eup %1110 }
 0x454   :  { %v841_v61 = vmul.f32 0.6931472, %v1111_v60 }
 0x456   :  { %v848_v53 = vadd.f32 %v841_v61, %v832_v52 }
 0x457   :  { %v1113_v57 = vpop.eup %1112 }
 0x458   :  { %852 = vst.msk [vmem:[%s1541_s8] sm:$0xff] %vm319_vm0, %v848_v53  ;;  %v843_v58 = vmul.f32 0.6931472, %v1113_v57 }
 0x45a   :  { %v849_v1 = vadd.f32 %v843_v58, %v833_v0 }
 0x45b   :  { %v1115_v2 = vpop.eup %1114 }
 0x45c   :  { %853 = vst.msk [vmem:[%s1541_s8 + $0x8] sm:$0xff] %vm319_vm0, %v849_v1  ;;  %v845_v3 = vmul.f32 0.6931472, %v1115_v2 }
 0x45e   :  { %v850_v62 = vadd.f32 %v845_v3, %v834_v6 }
 0x45f   :  { %v1117_v7 = vpop.eup %1116 }
 0x460   :  { %854 = vst.msk [vmem:[%s1541_s8 + $0x10] sm:$0xff] %vm319_vm0, %v850_v62  ;;  %v847_v4 = vmul.f32 0.6931472, %v1117_v7 }
 0x462   :  { %v851_v8 = vadd.f32 %v847_v4, %v835_v63 }
 0x464   :  { %855 = vst.msk [vmem:[%s1541_s8 + $0x18] sm:$0xff] %vm319_vm0, %v851_v8 }

</bundles_post_ra>
